<compile_context>
chip_gen: v5e
topology: v5e:2x2
jax: 0.10.0
libtpu: 0.0.40
codegen_flags: <defaults>
</compile_context>

<pallas_src>
import functools

import jax
import jax.numpy as jnp
from jax.experimental import pallas as pl
from jax.experimental.pallas import tpu as pltpu


# ------------------------------ helpers --------------------------------------
def _round_up(v, m):
    return (v + m - 1) // m * m


def _pad2(a, rows, cols):
    return jnp.pad(a, ((0, rows - a.shape[0]), (0, cols - a.shape[1])))


def _tpu_vmem_capacity_bytes():
    """Physical VMEM per TensorCore; conservative 64 MiB (v7x) if unknown."""
    try:
        info = pltpu.get_tpu_info()
        cap = getattr(info, "vmem_capacity_bytes", None)
        if cap:
            return int(cap)
    except Exception:
        pass
    return 64 * 1024 * 1024


def _fused_vmem_need_bytes(n_p, ci_p, ch_p, co_p):
    """Estimated VMEM footprint of the single-block fused kernel (+headroom)."""
    need = (
        2 * n_p * n_p                       # Â, bf16 (resident)
        + 2 * n_p * ci_p                    # X, bf16
        + 2 * (ci_p * ch_p + ch_p * co_p)   # W1, W2, bf16
        + 4 * (ch_p + co_p)                 # biases, f32
        + 4 * n_p * co_p                    # output, f32
        + 4 * n_p * ch_p                    # f32 intermediate (agg / h)
        + 4 * n_p * max(ch_p, co_p)         # second-layer f32 intermediate
    )
    return int(need * 1.25)                 # compiler-temp headroom


# -------------------- fused (small-N, Â resident) kernel ---------------------
def _gcn2_fused_kernel(adj_ref, x_ref, w1_ref, b1_ref, w2_ref, b2_ref, o_ref):
    adj = adj_ref[...]                      # bf16 [Np, Np], resident in VMEM

    def layer(feat_bf16, w_bf16, b_f32):
        # Static (trace-time) choice: put the narrower feature width on the
        # N x N aggregation matmul, which dominates FLOPs at real graph sizes.
        if feat_bf16.shape[1] <= w_bf16.shape[1]:
            # aggregate first:  (Â @ F) @ W
            agg = jnp.dot(adj, feat_bf16, preferred_element_type=jnp.float32)
            z = jnp.dot(agg.astype(jnp.bfloat16), w_bf16,
                        preferred_element_type=jnp.float32)
        else:
            # transform first:  Â @ (F @ W)
            fw = jnp.dot(feat_bf16, w_bf16, preferred_element_type=jnp.float32)
            z = jnp.dot(adj, fw.astype(jnp.bfloat16),
                        preferred_element_type=jnp.float32)
        return z + b_f32                    # fused VPU bias epilogue (f32)

    # layer 1 (+ relu); hidden stays in VMEM, downcast to bf16 only for the MXU
    h = jnp.maximum(layer(x_ref[...], w1_ref[...], b1_ref[...]), 0.0)
    # layer 2 (no relu), f32 output
    o_ref[...] = layer(h.astype(jnp.bfloat16), w2_ref[...], b2_ref[...])


def _gcn2_fused(adj, x, w1, b1, w2, b2, vmem_limit_bytes):
    n, c_in = x.shape
    c_hid, c_out = w1.shape[1], w2.shape[1]

    n_p = _round_up(n, 128)          # lane-dense Â / full MXU K-tiles
    ci_p = _round_up(c_in, 128)
    ch_p = _round_up(c_hid, 128)
    co_p = _round_up(c_out, 128)

    adj_p = _pad2(adj, n_p, n_p).astype(jnp.bfloat16)
    x_p = _pad2(x, n_p, ci_p).astype(jnp.bfloat16)
    w1_p = _pad2(w1, ci_p, ch_p).astype(jnp.bfloat16)
    w2_p = _pad2(w2, ch_p, co_p).astype(jnp.bfloat16)
    b1_p = _pad2(b1.reshape(1, -1), 1, ch_p)     # f32
    b2_p = _pad2(b2.reshape(1, -1), 1, co_p)     # f32

    flops = int(2 * n_p * n_p * min(ci_p, ch_p) + 2 * n_p * ci_p * ch_p
                + 2 * n_p * n_p * min(ch_p, co_p) + 2 * n_p * ch_p * co_p)
    bytes_accessed = int(2 * n_p * n_p + 2 * n_p * ci_p
                         + 2 * (ci_p * ch_p + ch_p * co_p)
                         + 4 * (ch_p + co_p) + 4 * n_p * co_p)

    out = pl.pallas_call(
        _gcn2_fused_kernel,
        out_shape=jax.ShapeDtypeStruct((n_p, co_p), jnp.float32),
        in_specs=[pl.BlockSpec(memory_space=pltpu.MemorySpace.VMEM)] * 6,
        out_specs=pl.BlockSpec(memory_space=pltpu.MemorySpace.VMEM),
        compiler_params=pltpu.CompilerParams(
            vmem_limit_bytes=int(vmem_limit_bytes)),
        cost_estimate=pl.CostEstimate(flops=flops, transcendentals=0,
                                      bytes_accessed=bytes_accessed),
    )(adj_p, x_p, w1_p, b1_p, w2_p, b2_p)
    return out[:n, :c_out]


# ---------------------- tiled (large-N / 2-TC) kernels ------------------------
def _transform_kernel(x_ref, w_ref, o_ref):
    # FW = F @ W : computed ONCE per layer (hoisted off the per-row-tile path)
    o_ref[...] = jnp.dot(x_ref[...], w_ref[...],
                         preferred_element_type=jnp.float32).astype(o_ref.dtype)


def _aggregate_kernel(adj_ref, fw_ref, b_ref, o_ref, acc_ref, *, relu):
    # Z = Â @ FW + b (+ relu), accumulated over the source-node (k) grid axis.
    @pl.when(pl.program_id(1) == 0)
    def _():
        acc_ref[...] = jnp.zeros_like(acc_ref)

    acc_ref[...] += jnp.dot(adj_ref[...], fw_ref[...],
                            preferred_element_type=jnp.float32)

    @pl.when(pl.program_id(1) == pl.num_programs(1) - 1)
    def _():
        z = acc_ref[...] + b_ref[...]
        if relu:
            z = jnp.maximum(z, 0.0)
        o_ref[...] = z.astype(o_ref.dtype)


def _layer_tiled(adj_bf16, feat_bf16, w_bf16, b_f32, *, relu, out_dtype, tm, tk):
    n_p = adj_bf16.shape[0]
    c_in = feat_bf16.shape[1]
    c_out = w_bf16.shape[1]

    # 1) FW = F @ W  (row-parallel, bf16 out for the MXU aggregation)
    fw = pl.pallas_call(
        _transform_kernel,
        out_shape=jax.ShapeDtypeStruct((n_p, c_out), jnp.bfloat16),
        grid=(n_p // tm,),
        in_specs=[pl.BlockSpec((tm, c_in), lambda i: (i, 0)),
                  pl.BlockSpec((c_in, c_out), lambda i: (0, 0))],
        out_specs=pl.BlockSpec((tm, c_out), lambda i: (i, 0)),
        compiler_params=pltpu.CompilerParams(
            dimension_semantics=("parallel",)),
        cost_estimate=pl.CostEstimate(
            flops=int(2 * n_p * c_in * c_out), transcendentals=0,
            bytes_accessed=int(2 * n_p * c_in + 2 * c_in * c_out
                               + 2 * n_p * c_out)),
    )(feat_bf16, w_bf16)

    # 2) Z = Â @ FW + b  — (row_tiles, k_tiles) grid; reduction axis last,
    #    output tile resident as accumulator, row tiles split across TCs.
    z = pl.pallas_call(
        functools.partial(_aggregate_kernel, relu=relu),
        out_shape=jax.ShapeDtypeStruct((n_p, c_out), out_dtype),
        grid=(n_p // tm, n_p // tk),
        in_specs=[pl.BlockSpec((tm, tk), lambda i, k: (i, k)),
                  pl.BlockSpec((tk, c_out), lambda i, k: (k, 0)),
                  pl.BlockSpec((1, c_out), lambda i, k: (0, 0))],
        out_specs=pl.BlockSpec((tm, c_out), lambda i, k: (i, 0)),
        scratch_shapes=[pltpu.VMEM((tm, c_out), jnp.float32)],
        compiler_params=pltpu.CompilerParams(
            dimension_semantics=("parallel", "arbitrary")),
        cost_estimate=pl.CostEstimate(
            flops=int(2 * n_p * n_p * c_out), transcendentals=0,
            bytes_accessed=int(2 * n_p * n_p + 2 * n_p * c_out
                               + n_p * c_out * jnp.dtype(out_dtype).itemsize)),
    )(adj_bf16, fw, b_f32)
    return z


def _gcn2_tiled(adj, x, w1, b1, w2, b2):
    n, c_in = x.shape
    c_hid, c_out = w1.shape[1], w2.shape[1]

    tm = 256                              # >=256 rows fill v6e/v7x 256x256 MXU
    n_p = _round_up(n, tm)
    tk = 512 if n_p % 512 == 0 else 256   # large K tiles amortize MXU push/pop
    ci_p = _round_up(c_in, 128)
    ch_p = _round_up(c_hid, 128)
    co_p = _round_up(c_out, 128)

    adj_p = _pad2(adj, n_p, n_p).astype(jnp.bfloat16)
    x_p = _pad2(x, n_p, ci_p).astype(jnp.bfloat16)
    w1_p = _pad2(w1, ci_p, ch_p).astype(jnp.bfloat16)
    w2_p = _pad2(w2, ch_p, co_p).astype(jnp.bfloat16)
    b1_p = _pad2(b1.reshape(1, -1), 1, ch_p)     # f32
    b2_p = _pad2(b2.reshape(1, -1), 1, co_p)     # f32

    # layer 1: hidden kept bf16 (halves h round-trip bytes; relu already applied)
    h = _layer_tiled(adj_p, x_p, w1_p, b1_p,
                     relu=True, out_dtype=jnp.bfloat16, tm=tm, tk=tk)
    # layer 2: f32 logits
    out = _layer_tiled(adj_p, h, w2_p, b2_p,
                       relu=False, out_dtype=jnp.float32, tm=tm, tk=tk)
    return out[:n, :c_out]


# ------------------------------- dispatcher -----------------------------------
def gcn2_forward_pallas(adj, x, w1, b1, w2, b2, force_tiled=False):
    """2-layer GCN forward: fused single-block path if Â + working set fits the
    per-generation VMEM budget, else a row-parallel tiled path."""
    n, c_in = x.shape
    c_hid, c_out = w1.shape[1], w2.shape[1]

    n_p = _round_up(n, 128)
    ci_p, ch_p, co_p = (_round_up(c, 128) for c in (c_in, c_hid, c_out))

    budget = int(0.70 * _tpu_vmem_capacity_bytes())   # headroom for compiler
    need = _fused_vmem_need_bytes(n_p, ci_p, ch_p, co_p)

    if force_tiled or need > budget:
        return _gcn2_tiled(adj, x, w1, b1, w2, b2)
    vmem_limit = min(budget, max(need, 32 * 1024 * 1024))
    return _gcn2_fused(adj, x, w1, b1, w2, b2, vmem_limit)


# ------------------------------- JAX glue ------------------------------------
def gcn_norm_dense(edge_index, edge_weight, num_nodes):
    """Dense D^-1/2 (A + I) D^-1/2, matching PyG gcn_norm(add_self_loops=True)."""
    src, dst = edge_index[0], edge_index[1]
    if edge_weight is None:
        edge_weight = jnp.ones(src.shape[0], dtype=jnp.float32)
    loop = jnp.arange(num_nodes, dtype=src.dtype)
    src = jnp.concatenate([src, loop])
    dst = jnp.concatenate([dst, loop])
    ew = jnp.concatenate([edge_weight, jnp.ones(num_nodes, dtype=jnp.float32)])

    deg = jnp.zeros((num_nodes,), jnp.float32).at[dst].add(ew)
    dinv = jnp.where(deg > 0, jax.lax.rsqrt(deg), 0.0)
    norm = dinv[src] * ew * dinv[dst]
    # Â[dst, src] so that out = Â @ x aggregates source features into targets.
    return jnp.zeros((num_nodes, num_nodes), jnp.float32).at[dst, src].add(norm)


def gcn_forward(x, edge_index, params, edge_weight=None, force_tiled=False):
    adj = gcn_norm_dense(edge_index, edge_weight, x.shape[0])
    # F.dropout(p=0.5, training=False) -> identity in inference mode.
    return gcn2_forward_pallas(adj, x, params["w1"], params["b1"],
                               params["w2"], params["b2"],
                               force_tiled=force_tiled)


def gcn_reference_f32(x, adj, params):
    """Pure-JAX f32 reference for validation."""
    h = jnp.maximum(adj @ (x @ params["w1"]) + params["b1"], 0.0)
    return adj @ (h @ params["w2"]) + params["b2"]


def glorot(key, shape):
    fan_in, fan_out = shape
    limit = (6.0 / (fan_in + fan_out)) ** 0.5
    return jax.random.uniform(key, shape, jnp.float32, -limit, limit)


# --------------------------------- main ---------------------------------------
if __name__ == "__main__":
    C_IN, C_HID, C_OUT = 8, 32, 4

    key = jax.random.PRNGKey(0)
    k_g1, k_g2, k_w1, k_w2 = jax.random.split(key, 4)

    # GCNConv parameters: glorot weights, zero bias (PyG defaults), deterministic.
    params = {
        "w1": glorot(k_w1, (C_IN, C_HID)),
        "b1": jnp.zeros((C_HID,), jnp.float32),
        "w2": glorot(k_w2, (C_HID, C_OUT)),
        "b2": jnp.zeros((C_OUT,), jnp.float32),
    }

    def make_graph(k, n, n_chords):
        kx, ke = jax.random.split(k)
        x = jax.random.normal(kx, (n, C_IN), jnp.float32)
        ring_src = jnp.arange(n, dtype=jnp.int32)
        ring_dst = (ring_src + 1) % n
        chords = jax.random.randint(ke, (2, n_chords), 0, n, dtype=jnp.int32)
        edge_index = jnp.concatenate(
            [jnp.stack([ring_src, ring_dst]), chords], axis=1)
        return x, edge_index

    # --- small graph: fused single-block path (Â resident in VMEM) ------------
    N1 = 16
    x1, ei1 = make_graph(k_g1, N1, 12)
    out1 = gcn_forward(x1, ei1, params)
    jax.block_until_ready(out1)
    assert out1.shape == (N1, C_OUT) and out1.dtype == jnp.float32
    ref1 = gcn_reference_f32(x1, gcn_norm_dense(ei1, None, N1), params)
    assert jnp.allclose(out1, ref1, atol=5e-2, rtol=5e-2), "fused path mismatch"

    # --- larger graph: row-parallel tiled path (forced, exercises the grid) ---
    N2 = 300
    x2, ei2 = make_graph(k_g2, N2, 600)
    out2 = gcn_forward(x2, ei2, params, force_tiled=True)
    jax.block_until_ready(out2)
    assert out2.shape == (N2, C_OUT) and out2.dtype == jnp.float32
    ref2 = gcn_reference_f32(x2, gcn_norm_dense(ei2, None, N2), params)
    assert jnp.allclose(out2, ref2, atol=5e-2, rtol=5e-2), "tiled path mismatch"

    print("KERNEL_OK")
</pallas_src>

<mosaic_0001>
module attributes {stable_mosaic.version = 11 : i64} {
  func.func @_gcn2_fused_kernel(%arg0: memref<128x128xbf16, #tpu.memory_space<vmem>>, %arg1: memref<128x128xbf16, #tpu.memory_space<vmem>>, %arg2: memref<128x128xbf16, #tpu.memory_space<vmem>>, %arg3: memref<1x128xf32, #tpu.memory_space<vmem>>, %arg4: memref<128x128xbf16, #tpu.memory_space<vmem>>, %arg5: memref<1x128xf32, #tpu.memory_space<vmem>>, %arg6: memref<128x128xf32, #tpu.memory_space<vmem>>) attributes {dimension_semantics = [], scalar_prefetch = 0 : i64, scratch_operands = 0 : i64, tpu.core_type = #tpu.core_type<tc>} {
    %c0 = arith.constant 0 : index
    %c0_0 = arith.constant 0 : index
    %0 = vector.load %arg0[%c0, %c0_0] : memref<128x128xbf16, #tpu.memory_space<vmem>>, vector<128x128xbf16>
    %c0_1 = arith.constant 0 : index
    %c0_2 = arith.constant 0 : index
    %1 = vector.load %arg1[%c0_1, %c0_2] : memref<128x128xbf16, #tpu.memory_space<vmem>>, vector<128x128xbf16>
    %c0_3 = arith.constant 0 : index
    %c0_4 = arith.constant 0 : index
    %2 = vector.load %arg2[%c0_3, %c0_4] : memref<128x128xbf16, #tpu.memory_space<vmem>>, vector<128x128xbf16>
    %c0_5 = arith.constant 0 : index
    %c0_6 = arith.constant 0 : index
    %3 = vector.load %arg3[%c0_5, %c0_6] : memref<1x128xf32, #tpu.memory_space<vmem>>, vector<1x128xf32>
    %cst = arith.constant dense<0.000000e+00> : vector<128x128xf32>
    %4 = tpu.matmul %0, %1, %cst {dimension_numbers = #tpu.dot_dimension_numbers<[1], [0], [0], [1], [0, 0, 1, 1], [], []>} : vector<128x128xbf16>, vector<128x128xbf16>, vector<128x128xf32> -> vector<128x128xf32>
    %5 = arith.truncf %4 : vector<128x128xf32> to vector<128x128xbf16>
    %cst_7 = arith.constant dense<0.000000e+00> : vector<128x128xf32>
    %6 = tpu.matmul %5, %2, %cst_7 {dimension_numbers = #tpu.dot_dimension_numbers<[1], [0], [0], [1], [0, 0, 1, 1], [], []>} : vector<128x128xbf16>, vector<128x128xbf16>, vector<128x128xf32> -> vector<128x128xf32>
    %7 = vector.broadcast %3 : vector<1x128xf32> to vector<128x128xf32>
    %8 = arith.addf %6, %7 : vector<128x128xf32>
    %cst_8 = arith.constant 0.000000e+00 : f32
    %9 = vector.broadcast %cst_8 : f32 to vector<128x128xf32>
    %10 = arith.maximumf %8, %9 : vector<128x128xf32>
    %11 = arith.truncf %10 : vector<128x128xf32> to vector<128x128xbf16>
    %c0_9 = arith.constant 0 : index
    %c0_10 = arith.constant 0 : index
    %12 = vector.load %arg4[%c0_9, %c0_10] : memref<128x128xbf16, #tpu.memory_space<vmem>>, vector<128x128xbf16>
    %c0_11 = arith.constant 0 : index
    %c0_12 = arith.constant 0 : index
    %13 = vector.load %arg5[%c0_11, %c0_12] : memref<1x128xf32, #tpu.memory_space<vmem>>, vector<1x128xf32>
    %cst_13 = arith.constant dense<0.000000e+00> : vector<128x128xf32>
    %14 = tpu.matmul %0, %11, %cst_13 {dimension_numbers = #tpu.dot_dimension_numbers<[1], [0], [0], [1], [0, 0, 1, 1], [], []>} : vector<128x128xbf16>, vector<128x128xbf16>, vector<128x128xf32> -> vector<128x128xf32>
    %15 = arith.truncf %14 : vector<128x128xf32> to vector<128x128xbf16>
    %cst_14 = arith.constant dense<0.000000e+00> : vector<128x128xf32>
    %16 = tpu.matmul %15, %12, %cst_14 {dimension_numbers = #tpu.dot_dimension_numbers<[1], [0], [0], [1], [0, 0, 1, 1], [], []>} : vector<128x128xbf16>, vector<128x128xbf16>, vector<128x128xf32> -> vector<128x128xf32>
    %17 = vector.broadcast %13 : vector<1x128xf32> to vector<128x128xf32>
    %18 = arith.addf %16, %17 : vector<128x128xf32>
    %c0_15 = arith.constant 0 : index
    %c0_16 = arith.constant 0 : index
    %19 = vector.load %arg6[%c0_15, %c0_16] : memref<128x128xf32, #tpu.memory_space<vmem>>, vector<128x128xf32>
    tpu.vector_store %arg6[%c0_15, %c0_16], %18 {strides = array<i32>} : memref<128x128xf32, #tpu.memory_space<vmem>>, vector<128x128xf32>,
    return
  }
}

</mosaic_0001>

<bundles_post_ra>
// kernel: tpu_custom_call.1
= control target key start
LH: loop header
LB: loop body
LE: loop exit
PB: predicated region body
PF: predicated region fallthrough
CT: control target
= control target key end

     0   :  { %11 = vsyncpa [#allocation3], 0  ;;  %s1020_s0 = inlined_call_operand.hbm [shape: bf16[128,128], index: 0, kind: input, shape index: {}]   ;;  %s1021_s1 = inlined_call_operand.hbm [shape: bf16[128,128], index: 1, kind: input, shape index: {}]   ;;  %s1022_s2 = inlined_call_operand.hbm [shape: bf16[128,128], index: 2, kind: input, shape index: {}]   ;;  %s1023_s3 = inlined_call_operand.vmem [shape: f32[1,128], index: 3, kind: input, shape index: {}]   ;;  %s1024_s4 = inlined_call_operand.hbm [shape: bf16[128,128], index: 4, kind: input, shape index: {}]   ;;  %s1025_s5 = inlined_call_operand.vmem [shape: f32[1,128], index: 5, kind: input, shape index: {}]   ;;  %s1026_s6 = inlined_call_operand.hbm [shape: f32[128,128], index: 6, kind: output, shape index: {}]  }
   0x1   :  { %12 = vsyncpa [#allocation6], 0 }
   0x2   :  { %13 = vsyncpa [#allocation9], 0 }
   0x3   :  { %14 = vsyncpa [#allocation4], 0  ;;  %s32_s23 = sshll.u32 %s1021_s1, 4  ;;  %s923_s24 = smov [#allocation5]   ;;  %s33_s23 = int_to_ptr.hbm [resolvable:$true] %s32_s23 }
   0x4   :  { %s34_s25 = sshll.u32 %s923_s24, 4  ;;  %s19_s28 = sshll.u32 %s1020_s0, 4  ;;  %s35_s25 = int_to_ptr.vmem [resolvable:$true] %s34_s25  ;;  %s20_s28 = int_to_ptr.hbm [resolvable:$true] %s19_s28 }
   0x5   :  { %s924_s29 = smov 64   ;;  %s925_s30 = smov 4  }
   0x6   :  { %40 = dma.hbm_to_vmem [thread:$0]  %s33_s23, 1024, %s35_s25, [#allocation6], %s924_s29, %s924_s29, %s925_s30  }
   0x7   :  { %s926_s7 = smov [#allocation2]   ;;  %s45_s11 = sshll.u32 %s1022_s2, 4  ;;  %s46_s11 = int_to_ptr.hbm [resolvable:$true] %s45_s11 }
   0x8   :  { %s21_s8 = sshll.u32 %s926_s7, 4  ;;  %s60_s13 = sshll.u32 %s1024_s4, 4  ;;  %s22_s8 = int_to_ptr.vmem [resolvable:$true] %s21_s8  ;;  %s61_s13 = int_to_ptr.hbm [resolvable:$true] %s60_s13 }
   0x9   :  { %27 = dma.hbm_to_vmem [thread:$0]  %s20_s28, 1024, %s22_s8, [#allocation3], %s924_s29, %s924_s29, %s925_s30  }
   0xa   :  { %s927_s14 = smov [#allocation7]   ;;  %s928_s0 = smov [#allocation8]  }
   0xb   :  { %s47_s15 = sshll.u32 %s927_s14, 4  ;;  %s62_s16 = sshll.u32 %s928_s0, 4  ;;  %s48_s15 = int_to_ptr.vmem [resolvable:$true] %s47_s15  ;;  %s63_s16 = int_to_ptr.vmem [resolvable:$true] %s62_s16 }
   0xc   :  { %53 = dma.hbm_to_vmem [thread:$0]  %s46_s11, 1024, %s48_s15, [#allocation6], %s924_s29, %s924_s29, %s925_s30  }
   0xd   :  { %68 = dma.hbm_to_vmem [thread:$0]  %s61_s13, 1024, %s63_s16, [#allocation9], %s924_s29, %s924_s29, %s925_s30  }
   0xe   :  { %915 = dma.done.wait [#allocation3], 1024  }
   0xf   :  { %916 = vsyncadd [#allocation3], 4294966272 }
  0x10   :  { %917 = dma.done.wait [#allocation6], 2048  }
  0x11   :  { %918 = vsyncadd [#allocation6], 4294965248 }
  0x12   :  { %919 = dma.done.wait [#allocation9], 1024  }
  0x13   :  { %920 = vsyncadd [#allocation9], 4294966272  ;;  %v767_v0 = vld [vmem:[#allocation5 + $0x38] sm:$0xff]  ;;  %v766_v1 = vld [vmem:[#allocation5 + $0x30] sm:$0xff]  ;;  %s609_s21 = sshll.u32 %s1026_s6, 4  ;;  %s930_s22 = smov 128   ;;  %s610_s21 = int_to_ptr.hbm [resolvable:$true] %s609_s21 }
  0x14   :  { %232 = vmatpush.bf16.msra.mxu0 %v767_v0  ;;  %v765_v2 = vld [vmem:[#allocation5 + $0x28] sm:$0xff]  ;;  %v764_v3 = vld [vmem:[#allocation5 + $0x20] sm:$0xff]  ;;  %v763_v4 = vld [vmem:[#allocation5 + $0x18] sm:$0xff]  ;;  %s931_s23 = smov 8  }
  0x15   :  { %v762_v5 = vld [vmem:[#allocation5 + $0x10] sm:$0xff]  ;;  %v761_v6 = vld [vmem:[#allocation5 + $0x8] sm:$0xff]  ;;  %v760_v7 = vld [vmem:[#allocation5] sm:$0xff] }
  0x16   :  { %v979_v8 = vld [vmem:[#allocation2] sm:$0xff]  ;;  %v982_v9 = vld [vmem:[#allocation2 + $0x8] sm:$0xff]  ;;  %v985_v10 = vld [vmem:[#allocation2 + $0x10] sm:$0xff] }
  0x17   :  { %v988_v11 = vld [vmem:[#allocation2 + $0x18] sm:$0xff]  ;;  %v991_v12 = vld [vmem:[#allocation2 + $0x20] sm:$0xff]  ;;  %v774_v14 = vld [vmem:[#allocation7 + $0x30] sm:$0xff] }
  0x18   :  { %233 = vmatpush.bf16.msra.mxu0 %v766_v1  ;;  %v775_v13 = vld [vmem:[#allocation7 + $0x38] sm:$0xff]  ;;  %v994_v15 = vld [vmem:[#allocation2 + $0x28] sm:$0xff]  ;;  %v772_v17 = vld [vmem:[#allocation7 + $0x20] sm:$0xff] }
  0x19   :  { %340 = vmatpush.bf16.msra.mxu1 %v775_v13  ;;  %v773_v16 = vld [vmem:[#allocation7 + $0x28] sm:$0xff]  ;;  %v771_v18 = vld [vmem:[#allocation7 + $0x18] sm:$0xff]  ;;  %v770_v19 = vld [vmem:[#allocation7 + $0x10] sm:$0xff] }
  0x1a   :  { %v997_v20 = vld [vmem:[#allocation2 + $0x30] sm:$0xff]  ;;  %v769_v21 = vld [vmem:[#allocation7 + $0x8] sm:$0xff]  ;;  %v768_v22 = vld [vmem:[#allocation7] sm:$0xff] }
  0x1b   :  { %v1000_v23 = vld [vmem:[#allocation2 + $0x38] sm:$0xff]  ;;  %v793_v49 = vld [vmem:[%s1023_s3] ss:$0 sm:$0xff] }
  0x1c   :  { %234 = vmatpush.bf16.msra.mxu0 %v765_v2 }
  0x1d   :  { %341 = vmatpush.bf16.msra.mxu1 %v774_v14 }
  0x20   :  { %235 = vmatpush.bf16.msra.mxu0 %v764_v3 }
  0x21   :  { %342 = vmatpush.bf16.msra.mxu1 %v773_v16 }
  0x24   :  { %236 = vmatpush.bf16.msra.mxu0 %v763_v4 }
  0x25   :  { %343 = vmatpush.bf16.msra.mxu1 %v772_v17 }
  0x28   :  { %237 = vmatpush.bf16.msra.mxu0 %v762_v5 }
  0x29   :  { %344 = vmatpush.bf16.msra.mxu1 %v771_v18 }
  0x2c   :  { %238 = vmatpush.bf16.msra.mxu0 %v761_v6 }
  0x2d   :  { %345 = vmatpush.bf16.msra.mxu1 %v770_v19 }
  0x30   :  { %239 = vmatpush.bf16.msra.mxu0 %v760_v7 }
  0x31   :  { %346 = vmatpush.bf16.msra.mxu1 %v769_v21 }
  0x33   :  { %240 = vmatmul.bf16.vlgmr.msra.gmra.mxu0 %v979_v8 }
  0x35   :  { %347 = vmatpush.bf16.msra.mxu1 %v768_v22 }
  0x43   :  { %245 = vmatmul.bf16.gmra.mxu0 %v982_v9 }
  0x53   :  { %250 = vmatmul.bf16.gmra.mxu0 %v985_v10 }
  0x63   :  { %255 = vmatmul.bf16.gmra.mxu0 %v988_v11 }
  0x73   :  { %260 = vmatmul.bf16.gmra.mxu0 %v991_v12 }
  0x83   :  { %265 = vmatmul.bf16.gmra.mxu0 %v994_v15 }
  0x93   :  { %270 = vmatmul.bf16.gmra.mxu0 %v997_v20 }
  0xa3   :  { %275 = vmatmul.bf16.gmra.mxu0 %v1000_v23 }
  0xb0   :  { %v241_v24 = vpop.f32.mrf.mxu0 }
  0xb8   :  { %v243_v25 = vpop.f32.mrf.mxu0 }
  0xb9   :  { %v281_v26 = vpack.c.bf16 %v243_v25, %v241_v24 }
  0xbb   :  { %348 = vmatmul.bf16.vlgmr.msra.gmra.mxu1 %v281_v26 }
  0xc0   :  { %v246_v27 = vpop.f32.mrf.mxu0 }
  0xc8   :  { %v248_v28 = vpop.f32.mrf.mxu0 }
  0xc9   :  { %v282_v29 = vpack.c.bf16 %v248_v28, %v246_v27 }
  0xcb   :  { %353 = vmatmul.bf16.gmra.mxu1 %v282_v29 }
  0xd0   :  { %v251_v30 = vpop.f32.mrf.mxu0 }
  0xd8   :  { %v253_v31 = vpop.f32.mrf.mxu0 }
  0xd9   :  { %v283_v32 = vpack.c.bf16 %v253_v31, %v251_v30 }
  0xdb   :  { %358 = vmatmul.bf16.gmra.mxu1 %v283_v32 }
  0xe0   :  { %v256_v33 = vpop.f32.mrf.mxu0 }
  0xe8   :  { %v258_v34 = vpop.f32.mrf.mxu0 }
  0xe9   :  { %v284_v35 = vpack.c.bf16 %v258_v34, %v256_v33 }
  0xeb   :  { %363 = vmatmul.bf16.gmra.mxu1 %v284_v35 }
  0xf0   :  { %v261_v36 = vpop.f32.mrf.mxu0 }
  0xf8   :  { %v263_v37 = vpop.f32.mrf.mxu0 }
  0xf9   :  { %v285_v38 = vpack.c.bf16 %v263_v37, %v261_v36 }
  0xfb   :  { %368 = vmatmul.bf16.gmra.mxu1 %v285_v38 }
 0x100   :  { %v266_v39 = vpop.f32.mrf.mxu0 }
 0x108   :  { %v268_v40 = vpop.f32.mrf.mxu0 }
 0x109   :  { %v286_v41 = vpack.c.bf16 %v268_v40, %v266_v39 }
 0x10b   :  { %373 = vmatmul.bf16.gmra.mxu1 %v286_v41 }
 0x110   :  { %v271_v42 = vpop.f32.mrf.mxu0 }
 0x118   :  { %v273_v43 = vpop.f32.mrf.mxu0 }
 0x119   :  { %v287_v44 = vpack.c.bf16 %v273_v43, %v271_v42 }
 0x11b   :  { %378 = vmatmul.bf16.gmra.mxu1 %v287_v44 }
 0x120   :  { %v276_v45 = vpop.f32.mrf.mxu0 }
 0x128   :  { %v278_v46 = vpop.f32.mrf.mxu0 }
 0x129   :  { %v288_v47 = vpack.c.bf16 %v278_v46, %v276_v45 }
 0x12b   :  { %383 = vmatmul.bf16.gmra.mxu1 %v288_v47 }
 0x138   :  { %v349_v48 = vpop.f32.mrf.mxu1 }
 0x139   :  { %v350_v50 = vadd.f32 %v793_v49, %v349_v48 }
 0x13b   :  { %v389_v53 = vmax.f32 %v350_v50, 0.0  ;;  %v782_v50 = vld [vmem:[#allocation8 + $0x30] sm:$0xff] }
 0x140   :  { %v351_v51 = vpop.f32.mrf.mxu1 }
 0x141   :  { %v352_v52 = vadd.f32 %v793_v49, %v351_v51  ;;  %v781_v51 = vld [vmem:[#allocation8 + $0x28] sm:$0xff] }
 0x143   :  { %v390_v54 = vmax.f32 %v352_v52, 0.0  ;;  %v780_v52 = vld [vmem:[#allocation8 + $0x20] sm:$0xff] }
 0x145   :  { %v405_v55 = vpack.c.bf16 %v390_v54, %v389_v53  ;;  %v779_v53 = vld [vmem:[#allocation8 + $0x18] sm:$0xff] }
 0x148   :  { %v354_v56 = vpop.f32.mrf.mxu1 }
 0x149   :  { %v355_v57 = vadd.f32 %v793_v49, %v354_v56 }
 0x14b   :  { %v391_v60 = vmax.f32 %v355_v57, 0.0 }
 0x150   :  { %v356_v58 = vpop.f32.mrf.mxu1 }
 0x151   :  { %v357_v59 = vadd.f32 %v793_v49, %v356_v58 }
 0x153   :  { %v392_v61 = vmax.f32 %v357_v59, 0.0 }
 0x155   :  { %v406_v62 = vpack.c.bf16 %v392_v61, %v391_v60 }
 0x158   :  { %v359_v63 = vpop.f32.mrf.mxu1 }
 0x159   :  { %v360_v0 = vadd.f32 %v793_v49, %v359_v63 }
 0x15b   :  { %v393_v3 = vmax.f32 %v360_v0, 0.0 }
 0x160   :  { %v361_v1 = vpop.f32.mrf.mxu1 }
 0x161   :  { %v362_v2 = vadd.f32 %v793_v49, %v361_v1 }
 0x163   :  { %v394_v4 = vmax.f32 %v362_v2, 0.0 }
 0x165   :  { %v407_v5 = vpack.c.bf16 %v394_v4, %v393_v3 }
 0x168   :  { %v364_v6 = vpop.f32.mrf.mxu1 }
 0x169   :  { %v365_v7 = vadd.f32 %v793_v49, %v364_v6 }
 0x16b   :  { %v395_v16 = vmax.f32 %v365_v7, 0.0 }
 0x170   :  { %v366_v13 = vpop.f32.mrf.mxu1 }
 0x171   :  { %v367_v14 = vadd.f32 %v793_v49, %v366_v13 }
 0x173   :  { %v396_v17 = vmax.f32 %v367_v14, 0.0  ;;  %v794_v14 = vld [vmem:[%s1025_s5] ss:$0 sm:$0xff]  ;;  %s929_s5 = smov [#allocation10]  }
 0x174   :  { %s607_s18 = sshll.u32 %s929_s5, 4  ;;  %s608_s18 = int_to_ptr.vmem [resolvable:$true] %s607_s18 }
 0x175   :  { %v408_v18 = vpack.c.bf16 %v396_v17, %v395_v16 }
 0x178   :  { %v369_v19 = vpop.f32.mrf.mxu1 }
 0x179   :  { %v370_v43 = vadd.f32 %v793_v49, %v369_v19 }
 0x17b   :  { %v397_v47 = vmax.f32 %v370_v43, 0.0 }
 0x180   :  { %v371_v21 = vpop.f32.mrf.mxu1 }
 0x181   :  { %v372_v40 = vadd.f32 %v793_v49, %v371_v21 }
 0x183   :  { %v398_v45 = vmax.f32 %v372_v40, 0.0 }
 0x185   :  { %v409_v48 = vpack.c.bf16 %v398_v45, %v397_v47 }
 0x188   :  { %v374_v22 = vpop.f32.mrf.mxu1 }
 0x189   :  { %v375_v38 = vadd.f32 %v793_v49, %v374_v22 }
 0x18b   :  { %v399_v44 = vmax.f32 %v375_v38, 0.0 }
 0x190   :  { %v376_v24 = vpop.f32.mrf.mxu1 }
 0x191   :  { %v377_v35 = vadd.f32 %v793_v49, %v376_v24 }
 0x193   :  { %v400_v41 = vmax.f32 %v377_v35, 0.0 }
 0x195   :  { %v410_v46 = vpack.c.bf16 %v400_v41, %v399_v44 }
 0x198   :  { %v379_v25 = vpop.f32.mrf.mxu1 }
 0x199   :  { %v380_v32 = vadd.f32 %v793_v49, %v379_v25 }
 0x19b   :  { %v401_v39 = vmax.f32 %v380_v32, 0.0 }
 0x1a0   :  { %v381_v26 = vpop.f32.mrf.mxu1 }
 0x1a1   :  { %v382_v30 = vadd.f32 %v793_v49, %v381_v26 }
 0x1a3   :  { %v402_v36 = vmax.f32 %v382_v30, 0.0 }
 0x1a5   :  { %v411_v42 = vpack.c.bf16 %v402_v36, %v401_v39 }
 0x1a8   :  { %v384_v27 = vpop.f32.mrf.mxu1 }
 0x1a9   :  { %v385_v28 = vadd.f32 %v793_v49, %v384_v27 }
 0x1ab   :  { %v403_v33 = vmax.f32 %v385_v28, 0.0 }
 0x1b0   :  { %v386_v29 = vpop.f32.mrf.mxu1 }
 0x1b1   :  { %v387_v31 = vadd.f32 %v793_v49, %v386_v29  ;;  %v783_v49 = vld [vmem:[#allocation8 + $0x38] sm:$0xff] }
 0x1b2   :  { %538 = vmatpush.bf16.msra.mxu3 %v783_v49 }
 0x1b3   :  { %v404_v34 = vmax.f32 %v387_v31, 0.0 }
 0x1b5   :  { %v412_v37 = vpack.c.bf16 %v404_v34, %v403_v33 }
 0x1b6   :  { %539 = vmatpush.bf16.msra.mxu3 %v782_v50 }
 0x1b7   :  { %430 = vmatpush.bf16.msra.mxu2 %v412_v37 }
 0x1ba   :  { %540 = vmatpush.bf16.msra.mxu3 %v781_v51 }
 0x1bb   :  { %431 = vmatpush.bf16.msra.mxu2 %v411_v42 }
 0x1be   :  { %541 = vmatpush.bf16.msra.mxu3 %v780_v52 }
 0x1bf   :  { %432 = vmatpush.bf16.msra.mxu2 %v410_v46 }
 0x1c2   :  { %542 = vmatpush.bf16.msra.mxu3 %v779_v53 }
 0x1c3   :  { %433 = vmatpush.bf16.msra.mxu2 %v409_v48 }
 0x1c7   :  { %434 = vmatpush.bf16.msra.mxu2 %v408_v18 }
 0x1cb   :  { %435 = vmatpush.bf16.msra.mxu2 %v407_v5 }
 0x1cf   :  { %436 = vmatpush.bf16.msra.mxu2 %v406_v62 }
 0x1d3   :  { %437 = vmatpush.bf16.msra.mxu2 %v405_v55 }
 0x1d6   :  { %438 = vmatmul.bf16.vlgmr.msra.gmra.mxu2 %v979_v8  ;;  %v778_v8 = vld [vmem:[#allocation8 + $0x10] sm:$0xff] }
 0x1d7   :  { %543 = vmatpush.bf16.msra.mxu3 %v778_v8 }
 0x1e6   :  { %443 = vmatmul.bf16.gmra.mxu2 %v982_v9  ;;  %v777_v9 = vld [vmem:[#allocation8 + $0x8] sm:$0xff] }
 0x1e7   :  { %544 = vmatpush.bf16.msra.mxu3 %v777_v9 }
 0x1f6   :  { %448 = vmatmul.bf16.gmra.mxu2 %v985_v10  ;;  %v776_v10 = vld [vmem:[#allocation8] sm:$0xff] }
 0x1f7   :  { %545 = vmatpush.bf16.msra.mxu3 %v776_v10 }
 0x206   :  { %453 = vmatmul.bf16.gmra.mxu2 %v988_v11 }
 0x216   :  { %458 = vmatmul.bf16.gmra.mxu2 %v991_v12 }
 0x226   :  { %463 = vmatmul.bf16.gmra.mxu2 %v994_v15 }
 0x236   :  { %468 = vmatmul.bf16.gmra.mxu2 %v997_v20 }
 0x246   :  { %473 = vmatmul.bf16.gmra.mxu2 %v1000_v23 }
 0x259   :  { %v439_v11 = vpop.f32.mrf.mxu2 }
 0x261   :  { %v441_v12 = vpop.f32.mrf.mxu2 }
 0x262   :  { %v479_v15 = vpack.c.bf16 %v441_v12, %v439_v11 }
 0x264   :  { %546 = vmatmul.bf16.vlgmr.msra.gmra.mxu3 %v479_v15 }
 0x269   :  { %v444_v54 = vpop.f32.mrf.mxu2 }
 0x271   :  { %v446_v55 = vpop.f32.mrf.mxu2 }
 0x272   :  { %v480_v56 = vpack.c.bf16 %v446_v55, %v444_v54 }
 0x274   :  { %551 = vmatmul.bf16.gmra.mxu3 %v480_v56 }
 0x279   :  { %v449_v57 = vpop.f32.mrf.mxu2 }
 0x281   :  { %v451_v58 = vpop.f32.mrf.mxu2 }
 0x282   :  { %v481_v59 = vpack.c.bf16 %v451_v58, %v449_v57 }
 0x284   :  { %556 = vmatmul.bf16.gmra.mxu3 %v481_v59 }
 0x289   :  { %v454_v20 = vpop.f32.mrf.mxu2 }
 0x291   :  { %v456_v60 = vpop.f32.mrf.mxu2 }
 0x292   :  { %v482_v61 = vpack.c.bf16 %v456_v60, %v454_v20 }
 0x294   :  { %561 = vmatmul.bf16.gmra.mxu3 %v482_v61 }
 0x299   :  { %v459_v62 = vpop.f32.mrf.mxu2 }
 0x2a1   :  { %v461_v63 = vpop.f32.mrf.mxu2 }
 0x2a2   :  { %v483_v0 = vpack.c.bf16 %v461_v63, %v459_v62 }
 0x2a4   :  { %566 = vmatmul.bf16.gmra.mxu3 %v483_v0 }
 0x2a9   :  { %v464_v23 = vpop.f32.mrf.mxu2 }
 0x2b1   :  { %v466_v1 = vpop.f32.mrf.mxu2 }
 0x2b2   :  { %v484_v2 = vpack.c.bf16 %v466_v1, %v464_v23 }
 0x2b4   :  { %571 = vmatmul.bf16.gmra.mxu3 %v484_v2 }
 0x2b9   :  { %v469_v3 = vpop.f32.mrf.mxu2 }
 0x2c1   :  { %v471_v4 = vpop.f32.mrf.mxu2 }
 0x2c2   :  { %v485_v5 = vpack.c.bf16 %v471_v4, %v469_v3 }
 0x2c4   :  { %576 = vmatmul.bf16.gmra.mxu3 %v485_v5 }
 0x2c9   :  { %v474_v6 = vpop.f32.mrf.mxu2 }
 0x2d1   :  { %v476_v7 = vpop.f32.mrf.mxu2 }
 0x2d2   :  { %v486_v13 = vpack.c.bf16 %v476_v7, %v474_v6 }
 0x2d4   :  { %581 = vmatmul.bf16.gmra.mxu3 %v486_v13 }
 0x2e7   :  { %v547_v16 = vpop.f32.mrf.mxu3 }
 0x2e8   :  { %v548_v17 = vadd.f32 %v794_v14, %v547_v16 }
 0x2ea   :  { %587 = vst [vmem:[#allocation10] sm:$0xff] %v548_v17 }
 0x2ef   :  { %v549_v18 = vpop.f32.mrf.mxu3 }
 0x2f0   :  { %v550_v19 = vadd.f32 %v794_v14, %v549_v18 }
 0x2f2   :  { %588 = vst [vmem:[#allocation10 + $0x8] sm:$0xff] %v550_v19 }
 0x2f7   :  { %v552_v21 = vpop.f32.mrf.mxu3 }
 0x2f8   :  { %v553_v22 = vadd.f32 %v794_v14, %v552_v21 }
 0x2fa   :  { %589 = vst [vmem:[#allocation10 + $0x10] sm:$0xff] %v553_v22 }
 0x2ff   :  { %v554_v24 = vpop.f32.mrf.mxu3 }
 0x300   :  { %v555_v25 = vadd.f32 %v794_v14, %v554_v24 }
 0x302   :  { %590 = vst [vmem:[#allocation10 + $0x18] sm:$0xff] %v555_v25 }
 0x307   :  { %v557_v26 = vpop.f32.mrf.mxu3 }
 0x308   :  { %v558_v27 = vadd.f32 %v794_v14, %v557_v26 }
 0x30a   :  { %591 = vst [vmem:[#allocation10 + $0x20] sm:$0xff] %v558_v27 }
 0x30f   :  { %v559_v28 = vpop.f32.mrf.mxu3 }
 0x310   :  { %v560_v29 = vadd.f32 %v794_v14, %v559_v28 }
 0x312   :  { %592 = vst [vmem:[#allocation10 + $0x28] sm:$0xff] %v560_v29 }
 0x317   :  { %v562_v30 = vpop.f32.mrf.mxu3 }
 0x318   :  { %v563_v31 = vadd.f32 %v794_v14, %v562_v30 }
 0x31a   :  { %593 = vst [vmem:[#allocation10 + $0x30] sm:$0xff] %v563_v31 }
 0x31f   :  { %v564_v32 = vpop.f32.mrf.mxu3 }
 0x320   :  { %v565_v33 = vadd.f32 %v794_v14, %v564_v32 }
 0x322   :  { %594 = vst [vmem:[#allocation10 + $0x38] sm:$0xff] %v565_v33 }
 0x327   :  { %v567_v34 = vpop.f32.mrf.mxu3 }
 0x328   :  { %v568_v35 = vadd.f32 %v794_v14, %v567_v34 }
 0x32a   :  { %595 = vst [vmem:[#allocation10 + $0x40] sm:$0xff] %v568_v35 }
 0x32f   :  { %v569_v36 = vpop.f32.mrf.mxu3 }
 0x330   :  { %v570_v37 = vadd.f32 %v794_v14, %v569_v36 }
 0x332   :  { %596 = vst [vmem:[#allocation10 + $0x48] sm:$0xff] %v570_v37 }
 0x337   :  { %v572_v38 = vpop.f32.mrf.mxu3 }
 0x338   :  { %v573_v39 = vadd.f32 %v794_v14, %v572_v38 }
 0x33a   :  { %597 = vst [vmem:[#allocation10 + $0x50] sm:$0xff] %v573_v39 }
 0x33f   :  { %v574_v40 = vpop.f32.mrf.mxu3 }
 0x340   :  { %v575_v41 = vadd.f32 %v794_v14, %v574_v40 }
 0x342   :  { %598 = vst [vmem:[#allocation10 + $0x58] sm:$0xff] %v575_v41 }
 0x347   :  { %v577_v42 = vpop.f32.mrf.mxu3 }
 0x348   :  { %v578_v43 = vadd.f32 %v794_v14, %v577_v42 }
 0x34a   :  { %599 = vst [vmem:[#allocation10 + $0x60] sm:$0xff] %v578_v43 }
 0x34f   :  { %v579_v44 = vpop.f32.mrf.mxu3 }
 0x350   :  { %v580_v45 = vadd.f32 %v794_v14, %v579_v44 }
 0x352   :  { %600 = vst [vmem:[#allocation10 + $0x68] sm:$0xff] %v580_v45 }
 0x357   :  { %v582_v46 = vpop.f32.mrf.mxu3 }
 0x358   :  { %v583_v47 = vadd.f32 %v794_v14, %v582_v46 }
 0x35a   :  { %601 = vst [vmem:[#allocation10 + $0x70] sm:$0xff] %v583_v47 }
 0x35f   :  { %v584_v48 = vpop.f32.mrf.mxu3 }
 0x360   :  { %v585_v49 = vadd.f32 %v794_v14, %v584_v48 }
 0x362   :  { %602 = vst [vmem:[#allocation10 + $0x78] sm:$0xff] %v585_v49 }
 0x363   :  { %615 = dma.vmem_to_hbm [thread:$0]  %s608_s18, 2048, %s610_s21, [#allocation4], %s930_s22, %s930_s22, %s931_s23  }
 0x364   :  { %921 = dma.done.wait [#allocation4], 2048  }
 0x365   :  { %922 = vsyncadd [#allocation4], 4294965248 }
 0x366   :  { %620 = vsyncpa [#allocation3], 1 }
 0x367   :  { %621 = vsyncpa [#allocation6], 1 }
 0x368   :  { %622 = vsyncpa [#allocation9], 1 }
 0x369   :  { %623 = vsyncpa [#allocation4], 1 }

</bundles_post_ra>
